<compile_context>
chip_gen: v6e
topology: v6e:2x2x1
jax: 0.10.0
libtpu: 0.0.40
codegen_flags: <defaults>
</compile_context>

<pallas_src>
import jax
import jax.numpy as jnp
from jax.experimental import pallas as pl
from jax.experimental.pallas import tpu as pltpu


def _round_up(x, m):
    return ((x + m - 1) // m) * m


def _pad_feature_dim(n):
    # 256-align large dims (fills the 2x256x256 MXU on v6e/v7x); keep 128 for
    # small dims so the mem-bound w_enc stream isn't inflated just for MXU fill.
    return _round_up(n, 256) if n >= 256 else _round_up(n, 128)


def _choose_k_tiling(D, tk_target=1024):
    """Return (D_pad, tk) with tk a multiple of 128 that divides D_pad."""
    D128 = _round_up(D, 128)
    if D128 <= tk_target:
        return D128, D128
    best = 128
    for tk in range(128, tk_target + 1, 128):
        if D128 % tk == 0:
            best = tk
    return D128, best


def _choose_tm(B, tm_target=512):
    """Row tile: as big as possible, but >=2 row tiles when the batch allows
    (keeps both v7x TensorCores busy), batch padded only to 16 sublanes."""
    B16 = _round_up(max(B, 1), 16)
    if B16 <= 16:
        return 16, B16
    tm = min(tm_target, _round_up(B16 // 2, 16))
    tm = max(tm, 16)
    B_pad = _round_up(B16, tm)
    return tm, B_pad


# --------------------------------------------------------------------------
# Kernel
# --------------------------------------------------------------------------
def _finetune_kernel(x_ref, w_enc_ref, b_enc_ref, w_cls_ref, b_cls_ref,
                     out_ref, acc_ref):
    """One (row-tile, K-tile) step of:
         sigmoid( ReLU(x @ W_enc + b_enc) @ W_cls + b_cls )
    """
    k = pl.program_id(1)

    @pl.when(k == 0)
    def _():
        acc_ref[...] = jnp.zeros_like(acc_ref)

    # Encoder partial contraction: (tm, tk) x (tk, F_pad) -> f32 accumulator.
    acc_ref[...] += jnp.dot(x_ref[...], w_enc_ref[...],
                            preferred_element_type=jnp.float32)

    @pl.when(k == pl.num_programs(1) - 1)
    def _():
        # Encoder epilogue: bias + ReLU (f32, VPU).
        feats = jnp.maximum(acc_ref[...] + b_enc_ref[...], 0.0)
        # Classifier head: Linear (bf16 MXU, f32 accumulate) + Sigmoid (EUP).
        logits = jnp.dot(feats.astype(w_cls_ref.dtype), w_cls_ref[...],
                         preferred_element_type=jnp.float32)
        out_ref[...] = jax.nn.sigmoid(logits + b_cls_ref[...])


# --------------------------------------------------------------------------
# Parameter preparation (done ONCE at load time, not per forward call)
# --------------------------------------------------------------------------
def pad_params(w_enc, b_enc, w_cls, b_cls, *, tk_target=1024):
    """Pad and cast parameters once.  Weights stored (in, out) — transposed
    w.r.t. torch nn.Linear."""
    D, F = w_enc.shape
    Fc, N = w_cls.shape
    assert Fc == F, "classifier in_features must match encoder features"

    D_pad, tk = _choose_k_tiling(D, tk_target)
    F_pad = _pad_feature_dim(F)
    N_pad = _pad_feature_dim(N)

    w_enc_p = jnp.zeros((D_pad, F_pad), jnp.bfloat16).at[:D, :F].set(
        w_enc.astype(jnp.bfloat16))
    b_enc_p = jnp.zeros((1, F_pad), jnp.float32).at[:, :F].set(
        jnp.reshape(b_enc, (1, F)).astype(jnp.float32))
    w_cls_p = jnp.zeros((F_pad, N_pad), jnp.bfloat16).at[:F, :N].set(
        w_cls.astype(jnp.bfloat16))
    b_cls_p = jnp.zeros((1, N_pad), jnp.float32).at[:, :N].set(
        jnp.reshape(b_cls, (1, N)).astype(jnp.float32))

    # TODO(synk): on v7x, store w_enc in fp8 with per-column scales folded into
    # the epilogue to halve the dominant HBM stream (fp8 MXU path; not drop-in
    # for v5e/v6e).
    return dict(w_enc=w_enc_p, b_enc=b_enc_p, w_cls=w_cls_p, b_cls=b_cls_p,
                D=D, F=F, N=N, tk=tk)


# --------------------------------------------------------------------------
# Forward wrapper
# --------------------------------------------------------------------------
def finetune_contrastive_forward(x_nchw, params, *, tm_target=512):
    """x_nchw: (B, C, H, W).  Returns (B, num_classes) sigmoid outputs (f32)."""
    B = x_nchw.shape[0]
    D, N = params["D"], params["N"]
    tk = params["tk"]
    w_enc_p, b_enc_p = params["w_enc"], params["b_enc"]
    w_cls_p, b_cls_p = params["w_cls"], params["b_cls"]
    D_pad, F_pad = w_enc_p.shape
    N_pad = w_cls_p.shape[1]

    x2d = x_nchw.reshape(B, -1)
    assert x2d.shape[1] == D, "input C*H*W does not match encoder input dim"

    tm, B_pad = _choose_tm(B, tm_target)

    x_p = x2d.astype(jnp.bfloat16)
    if (B_pad, D_pad) != x_p.shape:
        x_p = jnp.zeros((B_pad, D_pad), jnp.bfloat16).at[:B, :D].set(x_p)

    n_row_tiles = B_pad // tm
    n_k_tiles = D_pad // tk
    grid = (n_row_tiles, n_k_tiles)

    # Live VMEM footprint (double-buffered streamed operands + accumulator),
    # floored at the 32 MiB default and capped at 48 MiB (safe on v7x).
    vmem_need = (2 * tm * tk * 2            # x tiles (bf16, double-buffered)
                 + 2 * tk * F_pad * 2       # w_enc tiles (bf16)
                 + 2 * F_pad * N_pad * 2    # w_cls (fetched once)
                 + 2 * (F_pad + N_pad) * 4  # biases
                 + 2 * tm * N_pad * 4       # output tile (f32)
                 + tm * F_pad * 4)          # accumulator scratch
    vmem_limit = int(min(max(2 * vmem_need, 32 * 1024 * 1024),
                         48 * 1024 * 1024))

    flops = 2 * B_pad * D_pad * F_pad + 2 * B_pad * F_pad * N_pad
    bytes_accessed = (int(x_p.size) * 2
                      + n_row_tiles * int(w_enc_p.size) * 2   # re-streamed/row tile
                      + int(w_cls_p.size) * 2
                      + int(b_enc_p.size) * 4 + int(b_cls_p.size) * 4
                      + B_pad * N_pad * 4)

    out_padded = pl.pallas_call(
        _finetune_kernel,
        out_shape=jax.ShapeDtypeStruct((B_pad, N_pad), jnp.float32),
        grid_spec=pltpu.PrefetchScalarGridSpec(
            num_scalar_prefetch=0,
            grid=grid,
            in_specs=[
                pl.BlockSpec((tm, tk), lambda i, k: (i, k)),        # x
                pl.BlockSpec((tk, F_pad), lambda i, k: (k, 0)),     # w_enc
                pl.BlockSpec((1, F_pad), lambda i, k: (0, 0)),      # b_enc
                pl.BlockSpec((F_pad, N_pad), lambda i, k: (0, 0)),  # w_cls
                pl.BlockSpec((1, N_pad), lambda i, k: (0, 0)),      # b_cls
            ],
            out_specs=pl.BlockSpec((tm, N_pad), lambda i, k: (i, 0)),
            scratch_shapes=[pltpu.VMEM((tm, F_pad), jnp.float32)],
        ),
        compiler_params=pltpu.CompilerParams(
            dimension_semantics=("parallel", "arbitrary"),
            vmem_limit_bytes=vmem_limit,
        ),
        cost_estimate=pl.CostEstimate(
            flops=flops,
            transcendentals=B_pad * N_pad,
            bytes_accessed=bytes_accessed,
        ),
    )(x_p, w_enc_p, b_enc_p, w_cls_p, b_cls_p)

    return out_padded[:B, :N]


def reference_forward(x_nchw, w_enc, b_enc, w_cls, b_cls):
    """Plain-JAX f32 reference for correctness checking."""
    B = x_nchw.shape[0]
    x2d = x_nchw.reshape(B, -1).astype(jnp.float32)
    feats = jnp.maximum(x2d @ w_enc + jnp.reshape(b_enc, (1, -1)), 0.0)
    return jax.nn.sigmoid(feats @ w_cls + jnp.reshape(b_cls, (1, -1)))


if __name__ == "__main__":
    # Small deterministic example consistent with the module:
    # batch=2, channels=4, spatial=16x16 -> D=1024 (one 1024-wide K tile),
    # in_features (encoder feature dim)=32, num_classes=10.
    B, C, H, W = 2, 4, 16, 16
    D = C * H * W
    in_features = 32       # base_model.projection_head[0].in_features
    num_classes = 10

    key = jax.random.PRNGKey(0)
    k_x, k_we, k_be, k_wc, k_bc = jax.random.split(key, 5)

    x = jax.random.normal(k_x, (B, C, H, W), dtype=jnp.float32)

    # Deterministic synthetic parameters (weights stored (in, out)).
    w_enc = (jax.random.normal(k_we, (D, in_features), dtype=jnp.float32)
             * (1.0 / jnp.sqrt(float(D))))
    b_enc = jax.random.normal(k_be, (in_features,), dtype=jnp.float32) * 0.01
    w_cls = (jax.random.normal(k_wc, (in_features, num_classes),
                               dtype=jnp.float32)
             * (1.0 / jnp.sqrt(float(in_features))))
    b_cls = jax.random.normal(k_bc, (num_classes,), dtype=jnp.float32) * 0.01

    # Pad/cast parameters ONCE (parameter-load time), then run the forward.
    params = pad_params(w_enc, b_enc, w_cls, b_cls)

    out = finetune_contrastive_forward(x, params)
    out = jax.block_until_ready(out)

    ref = reference_forward(x, w_enc, b_enc, w_cls, b_cls)
    assert out.shape == (B, num_classes), out.shape
    # bf16 matmuls with f32 accumulation vs f32 reference: loosened tolerance.
    assert jnp.allclose(out, ref, atol=2e-2, rtol=2e-2), "mismatch vs reference"

    print("KERNEL_OK")
</pallas_src>

<mosaic_0001>
module attributes {stable_mosaic.version = 11 : i64} {
  func.func @_finetune_kernel(%arg0: i32, %arg1: i32, %arg2: memref<16x1024xbf16, #tpu.memory_space<vmem>>, %arg3: memref<1024x128xbf16, #tpu.memory_space<vmem>>, %arg4: memref<1x128xf32, #tpu.memory_space<vmem>>, %arg5: memref<128x128xbf16, #tpu.memory_space<vmem>>, %arg6: memref<1x128xf32, #tpu.memory_space<vmem>>, %arg7: memref<16x128xf32, #tpu.memory_space<vmem>>, %arg8: memref<16x128xf32, #tpu.memory_space<vmem>>) attributes {dimension_semantics = [#tpu.dimension_semantics<parallel>, #tpu.dimension_semantics<arbitrary>], iteration_bounds = array<i64: 1, 1>, scalar_prefetch = 0 : i64, scratch_operands = 1 : i64, tpu.core_type = #tpu.core_type<tc>, window_params = [{transform_indices = @transform_0, window_bounds = array<i64: 16, 1024>}, {transform_indices = @transform_1, window_bounds = array<i64: 1024, 128>}, {pipeline_mode = #tpu.pipeline_mode<synchronous>, transform_indices = @transform_2, window_bounds = array<i64: 1, 128>}, {pipeline_mode = #tpu.pipeline_mode<synchronous>, transform_indices = @transform_3, window_bounds = array<i64: 128, 128>}, {pipeline_mode = #tpu.pipeline_mode<synchronous>, transform_indices = @transform_4, window_bounds = array<i64: 1, 128>}, {transform_indices = @transform_5, window_bounds = array<i64: 16, 128>}]} {
    %c0_i32 = arith.constant 0 : i32
    %0 = arith.cmpi eq, %arg1, %c0_i32 : i32
    %1 = arith.extui %0 : i1 to i32
    %c0_i32_0 = arith.constant 0 : i32
    %2 = arith.cmpi ne, %1, %c0_i32_0 : i32
    scf.if %2 {
      %cst_10 = arith.constant 0.000000e+00 : f32
      %12 = vector.broadcast %cst_10 : f32 to vector<16x128xf32>
      %c0_11 = arith.constant 0 : index
      %c0_12 = arith.constant 0 : index
      %13 = vector.load %arg8[%c0_11, %c0_12] : memref<16x128xf32, #tpu.memory_space<vmem>>, vector<16x128xf32>
      tpu.vector_store %arg8[%c0_11, %c0_12], %12 {strides = array<i32>} : memref<16x128xf32, #tpu.memory_space<vmem>>, vector<16x128xf32>,
    } else {
    }
    %c0 = arith.constant 0 : index
    %c0_1 = arith.constant 0 : index
    %3 = vector.load %arg8[%c0, %c0_1] : memref<16x128xf32, #tpu.memory_space<vmem>>, vector<16x128xf32>
    %c0_2 = arith.constant 0 : index
    %c0_3 = arith.constant 0 : index
    %4 = vector.load %arg2[%c0_2, %c0_3] : memref<16x1024xbf16, #tpu.memory_space<vmem>>, vector<16x1024xbf16>
    %c0_4 = arith.constant 0 : index
    %c0_5 = arith.constant 0 : index
    %5 = vector.load %arg3[%c0_4, %c0_5] : memref<1024x128xbf16, #tpu.memory_space<vmem>>, vector<1024x128xbf16>
    %cst = arith.constant dense<0.000000e+00> : vector<16x128xf32>
    %6 = tpu.matmul %4, %5, %cst {dimension_numbers = #tpu.dot_dimension_numbers<[1], [0], [0], [1], [0, 0, 1, 1], [], []>} : vector<16x1024xbf16>, vector<1024x128xbf16>, vector<16x128xf32> -> vector<16x128xf32>
    %7 = arith.addf %3, %6 : vector<16x128xf32>
    %c0_6 = arith.constant 0 : index
    %c0_7 = arith.constant 0 : index
    %8 = vector.load %arg8[%c0_6, %c0_7] : memref<16x128xf32, #tpu.memory_space<vmem>>, vector<16x128xf32>
    tpu.vector_store %arg8[%c0_6, %c0_7], %7 {strides = array<i32>} : memref<16x128xf32, #tpu.memory_space<vmem>>, vector<16x128xf32>,
    %c0_i32_8 = arith.constant 0 : i32
    %9 = arith.cmpi eq, %arg1, %c0_i32_8 : i32
    %10 = arith.extui %9 : i1 to i32
    %c0_i32_9 = arith.constant 0 : i32
    %11 = arith.cmpi ne, %10, %c0_i32_9 : i32
    scf.if %11 {
      %c0_10 = arith.constant 0 : index
      %c0_11 = arith.constant 0 : index
      %12 = vector.load %arg8[%c0_10, %c0_11] : memref<16x128xf32, #tpu.memory_space<vmem>>, vector<16x128xf32>
      %c0_12 = arith.constant 0 : index
      %c0_13 = arith.constant 0 : index
      %13 = vector.load %arg4[%c0_12, %c0_13] : memref<1x128xf32, #tpu.memory_space<vmem>>, vector<1x128xf32>
      %14 = vector.broadcast %13 : vector<1x128xf32> to vector<16x128xf32>
      %15 = arith.addf %12, %14 : vector<16x128xf32>
      %cst_14 = arith.constant 0.000000e+00 : f32
      %16 = vector.broadcast %cst_14 : f32 to vector<16x128xf32>
      %17 = arith.maximumf %15, %16 : vector<16x128xf32>
      %18 = arith.truncf %17 : vector<16x128xf32> to vector<16x128xbf16>
      %c0_15 = arith.constant 0 : index
      %c0_16 = arith.constant 0 : index
      %19 = vector.load %arg5[%c0_15, %c0_16] : memref<128x128xbf16, #tpu.memory_space<vmem>>, vector<128x128xbf16>
      %cst_17 = arith.constant dense<0.000000e+00> : vector<16x128xf32>
      %20 = tpu.matmul %18, %19, %cst_17 {dimension_numbers = #tpu.dot_dimension_numbers<[1], [0], [0], [1], [0, 0, 1, 1], [], []>} : vector<16x128xbf16>, vector<128x128xbf16>, vector<16x128xf32> -> vector<16x128xf32>
      %c0_18 = arith.constant 0 : index
      %c0_19 = arith.constant 0 : index
      %21 = vector.load %arg6[%c0_18, %c0_19] : memref<1x128xf32, #tpu.memory_space<vmem>>, vector<1x128xf32>
      %22 = vector.broadcast %21 : vector<1x128xf32> to vector<16x128xf32>
      %23 = arith.addf %20, %22 : vector<16x128xf32>
      %24 = arith.negf %23 : vector<16x128xf32>
      %25 = math.exp %24 : vector<16x128xf32>
      %cst_20 = arith.constant 1.000000e+00 : f32
      %26 = vector.broadcast %cst_20 : f32 to vector<16x128xf32>
      %27 = arith.addf %26, %25 : vector<16x128xf32>
      %28 = arith.divf %26, %27 : vector<16x128xf32>
      %c0_21 = arith.constant 0 : index
      %c0_22 = arith.constant 0 : index
      %29 = vector.load %arg7[%c0_21, %c0_22] : memref<16x128xf32, #tpu.memory_space<vmem>>, vector<16x128xf32>
      tpu.vector_store %arg7[%c0_21, %c0_22], %28 {strides = array<i32>} : memref<16x128xf32, #tpu.memory_space<vmem>>, vector<16x128xf32>,
    } else {
    }
    return
  }
  func.func @transform_0(%arg0: i32, %arg1: i32) -> (i32, i32) {
    %c0_i32 = arith.constant 0 : i32
    return %arg0, %arg1 : i32, i32
  }
  func.func @transform_1(%arg0: i32, %arg1: i32) -> (i32, i32) {
    %c0_i32 = arith.constant 0 : i32
    %c0_i32_0 = arith.constant 0 : i32
    return %arg1, %c0_i32 : i32, i32
  }
  func.func @transform_2(%arg0: i32, %arg1: i32) -> (i32, i32) {
    %c0_i32 = arith.constant 0 : i32
    %c0_i32_0 = arith.constant 0 : i32
    %c0_i32_1 = arith.constant 0 : i32
    return %c0_i32, %c0_i32_0 : i32, i32
  }
  func.func @transform_3(%arg0: i32, %arg1: i32) -> (i32, i32) {
    %c0_i32 = arith.constant 0 : i32
    %c0_i32_0 = arith.constant 0 : i32
    %c0_i32_1 = arith.constant 0 : i32
    return %c0_i32, %c0_i32_0 : i32, i32
  }
  func.func @transform_4(%arg0: i32, %arg1: i32) -> (i32, i32) {
    %c0_i32 = arith.constant 0 : i32
    %c0_i32_0 = arith.constant 0 : i32
    %c0_i32_1 = arith.constant 0 : i32
    return %c0_i32, %c0_i32_0 : i32, i32
  }
  func.func @transform_5(%arg0: i32, %arg1: i32) -> (i32, i32) {
    %c0_i32 = arith.constant 0 : i32
    %c0_i32_0 = arith.constant 0 : i32
    return %arg0, %c0_i32 : i32, i32
  }
}

</mosaic_0001>

<bundles_post_ra>
// kernel: tpu_custom_call.1
= control target key start
LH: loop header
LB: loop body
LE: loop exit
PB: predicated region body
PF: predicated region fallthrough
CT: control target
= control target key end

     0   :  { %10 = vsyncpa [#allocation4], 0  ;;  %s1399_s0 = inlined_call_operand.hbm [shape: bf16[16,1024], index: 0, kind: input, shape index: {}]   ;;  %s1400_s1 = inlined_call_operand.hbm [shape: bf16[1024,128], index: 1, kind: input, shape index: {}]   ;;  %s1401_s2 = inlined_call_operand.vmem [shape: f32[1,128], index: 2, kind: input, shape index: {}]   ;;  %s1402_s3 = inlined_call_operand.hbm [shape: bf16[128,128], index: 3, kind: input, shape index: {}]   ;;  %s1403_s4 = inlined_call_operand.vmem [shape: f32[1,128], index: 4, kind: input, shape index: {}]   ;;  %s1404_s5 = inlined_call_operand.hbm [shape: f32[16,128], index: 5, kind: output, shape index: {}]  }
   0x1   :  { %11 = vsyncpa [#allocation7], 0 }
   0x2   :  { %12 = vsyncpa [#allocation5], 0  ;;  %s1339_s18 = smov [#allocation6]  }
   0x3   :  { %s30_s19 = sshll.u32 %s1339_s18, 4  ;;  %s31_s19 = int_to_ptr.vmem [resolvable:$true] %s30_s19 }
   0x4   :  { %s1261_s20 = scalar_lea.vmem %s31_s19, 8192  ;;  %p1266_p1 = scmp.lt.s32.totalorder %s31_s19, %s31_s19 }
   0x5   :  { %p1262_p0 = scmp.ne.s32.totalorder %s31_s19, %s1261_s20  ;;  %p1267_p2 = scmp.lt.s32.totalorder %s1261_s20, %s1261_s20 }
   0x7   :  { %p1268_p3 = por %p1267_p2, %p1266_p1 }
   0x9   :  { %p1269_p4 = pnand %p1268_p3, %p1262_p0 }
   0xb   :  { %1272 = shalt.err (!%p1269_p4)
}
   0xc   :  { %s1340_s21 = smov 64   ;;  %s1341_s22 = smov 4  }
   0xd   :  { %36 = dma.hbm_to_vmem [thread:$0]  %s1400_s1, 8192, %s31_s19, [#allocation7], %s1340_s21, %s1340_s21, %s1341_s22  }
   0xe   :  { %s1342_s25 = smov [#allocation3]  }
   0xf   :  { %s18_s26 = sshll.u32 %s1342_s25, 4  ;;  %s19_s26 = int_to_ptr.vmem [resolvable:$true] %s18_s26 }
  0x10   :  { %s1281_s27 = scalar_lea.vmem %s19_s26, 1024  ;;  %p1286_p6 = scmp.lt.s32.totalorder %s19_s26, %s19_s26 }
  0x11   :  { %p1282_p5 = scmp.ne.s32.totalorder %s19_s26, %s1281_s27  ;;  %p1287_p7 = scmp.lt.s32.totalorder %s1281_s27, %s1281_s27 }
  0x13   :  { %p1288_p8 = por %p1287_p7, %p1286_p6 }
  0x15   :  { %p1289_p9 = pnand %p1288_p8, %p1282_p5 }
  0x17   :  { %1292 = shalt.err (!%p1289_p9)
}
  0x18   :  { %s1343_s28 = smov 512   ;;  %s1344_s29 = smov 32  }
  0x19   :  { %24 = dma.hbm_to_vmem [thread:$0]  %s1399_s0, 1024, %s19_s26, [#allocation4], %s1343_s28, %s1343_s28, %s1344_s29  }
  0x1a   :  { %s1345_s7 = smov [#allocation8]  }
  0x1b   :  { %s44_s8 = sshll.u32 %s1345_s7, 4  ;;  %s45_s8 = int_to_ptr.vmem [resolvable:$true] %s44_s8 }
  0x1c   :  { %s1301_s1 = scalar_lea.vmem %s45_s8, 1024  ;;  %p1306_p11 = scmp.lt.s32.totalorder %s45_s8, %s45_s8 }
  0x1d   :  { %p1302_p10 = scmp.ne.s32.totalorder %s45_s8, %s1301_s1  ;;  %p1307_p12 = scmp.lt.s32.totalorder %s1301_s1, %s1301_s1 }
  0x1f   :  { %p1308_p13 = por %p1307_p12, %p1306_p11 }
  0x21   :  { %p1309_p0 = pnand %p1308_p13, %p1302_p10 }
  0x23   :  { %1312 = shalt.err (!%p1309_p0)
}
  0x24   :  { %50 = dma.hbm_to_vmem [thread:$0]  %s1402_s3, 1024, %s45_s8, [#allocation7], %s1340_s21, %s1340_s21, %s1341_s22  }
  0x25   :  { %1333 = dma.done.wait [#allocation4], 1024  }
  0x26   :  { %1334 = vsyncadd [#allocation4], 4294966272 }
  0x27   :  { %1335 = dma.done.wait [#allocation7], 9216  }
  0x28   :  { %1336 = vsyncadd [#allocation7], 4294958080  ;;  %v1173_v0 = vld [vmem:[#allocation6 + $0x78] sm:$0xff]   ;;  %v1177_v4 = vld [vmem:[#allocation6 + $0x70] sm:$0xff]   ;;  %vm1347_vm0 = vmmov 0  }
  0x29   :  { %v1174_v1 = vld [vmem:[#allocation6 + $0xf8] sm:$0xff]   ;;  %1044 = vmatprep.subr.bf16.mxu0 %v1173_v0  ;;  %v1178_v5 = vld [vmem:[#allocation6 + $0xf0] sm:$0xff]   ;;  %v1181_v8 = vld [vmem:[#allocation6 + $0x68] sm:$0xff]  }
  0x2a   :  { %v1175_v2 = vld [vmem:[#allocation6 + $0x38] sm:$0xff]   ;;  %1066 = vmatprep.subr.bf16.mxu1 %v1174_v1  ;;  %v1179_v6 = vld [vmem:[#allocation6 + $0x30] sm:$0xff]   ;;  %v1182_v9 = vld [vmem:[#allocation6 + $0xe8] sm:$0xff]  }
  0x2b   :  { %v1176_v3 = vld [vmem:[#allocation6 + $0xb8] sm:$0xff]   ;;  %1045 = vmatpush3.bf16.msra.mxu0 %v1175_v2  ;;  %v1180_v7 = vld [vmem:[#allocation6 + $0xb0] sm:$0xff]   ;;  %v1183_v10 = vld [vmem:[#allocation6 + $0x28] sm:$0xff]  }
  0x2c   :  { %1067 = vmatpush3.bf16.msra.mxu1 %v1176_v3  ;;  %1046 = vmatprep.subr.bf16.mxu0 %v1177_v4  ;;  %v1184_v11 = vld [vmem:[#allocation6 + $0xa8] sm:$0xff]   ;;  %v1185_v12 = vld [vmem:[#allocation6 + $0x60] sm:$0xff]   ;;  %v1189_v16 = vld [vmem:[#allocation6 + $0x58] sm:$0xff]  }
  0x2d   :  { %1068 = vmatprep.subr.bf16.mxu1 %v1178_v5  ;;  %v1186_v13 = vld [vmem:[#allocation6 + $0xe0] sm:$0xff]   ;;  %v1190_v17 = vld [vmem:[#allocation6 + $0xd8] sm:$0xff]   ;;  %v1193_v20 = vld [vmem:[#allocation6 + $0x50] sm:$0xff]  }
  0x2e   :  { %v1187_v14 = vld [vmem:[#allocation6 + $0x20] sm:$0xff]   ;;  %v1191_v18 = vld [vmem:[#allocation6 + $0x18] sm:$0xff]   ;;  %v1194_v21 = vld [vmem:[#allocation6 + $0xd0] sm:$0xff]  }
  0x2f   :  { %1047 = vmatpush3.bf16.msra.mxu0 %v1179_v6  ;;  %v1188_v15 = vld [vmem:[#allocation6 + $0xa0] sm:$0xff]   ;;  %v1192_v19 = vld [vmem:[#allocation6 + $0x98] sm:$0xff]   ;;  %v1195_v22 = vld [vmem:[#allocation6 + $0x10] sm:$0xff]  }
  0x30   :  { %1069 = vmatpush3.bf16.msra.mxu1 %v1180_v7  ;;  %1048 = vmatprep.subr.bf16.mxu0 %v1181_v8  ;;  %v1196_v23 = vld [vmem:[#allocation6 + $0x90] sm:$0xff]   ;;  %v1197_v24 = vld [vmem:[#allocation6 + $0x48] sm:$0xff]   ;;  %v1201_v28 = vld [vmem:[#allocation6 + $0x40] sm:$0xff]  }
  0x31   :  { %1070 = vmatprep.subr.bf16.mxu1 %v1182_v9  ;;  %v1198_v25 = vld [vmem:[#allocation6 + $0xc8] sm:$0xff]   ;;  %v1202_v29 = vld [vmem:[#allocation6 + $0xc0] sm:$0xff]   ;;  %v1205_v40 = vld [vmem:[#allocation6 + $0x178] sm:$0xff]  }
  0x32   :  { %v1199_v26 = vld [vmem:[#allocation6 + $0x8] sm:$0xff]   ;;  %v1203_v30 = vld [vmem:[#allocation6] sm:$0xff]   ;;  %v1206_v41 = vld [vmem:[#allocation6 + $0x1f8] sm:$0xff]  }
  0x33   :  { %1049 = vmatpush3.bf16.msra.mxu0 %v1183_v10  ;;  %v1200_v27 = vld [vmem:[#allocation6 + $0x88] sm:$0xff]   ;;  %v1204_v31 = vld [vmem:[#allocation6 + $0x80] sm:$0xff]   ;;  %v1207_v42 = vld [vmem:[#allocation6 + $0x138] sm:$0xff]  }
  0x34   :  { %1071 = vmatpush3.bf16.msra.mxu1 %v1184_v11  ;;  %1050 = vmatprep.subr.bf16.mxu0 %v1185_v12  ;;  %v71_v32 = vld [vmem:[#allocation3] sm:$0xff]  ;;  %v72_v34 = vld [vmem:[#allocation3 + $0x8] sm:$0xff]  ;;  %v1208_v43 = vld [vmem:[#allocation6 + $0x1b8] sm:$0xff]  }
  0x35   :  { %1072 = vmatprep.subr.bf16.mxu1 %v1186_v13  ;;  %v75_v33 = vld [vmem:[#allocation3 + $0x20] sm:$0xff]  ;;  %v76_v37 = vld [vmem:[#allocation3 + $0x28] sm:$0xff]  ;;  %v1209_v44 = vld [vmem:[#allocation6 + $0x170] sm:$0xff]  }
  0x36   :  { %v960_v35 = vcombine.low %v71_v32, %v75_v33  ;;  %v961_v36 = vcombine.high %v71_v32, %v75_v33  ;;  %v962_v38 = vcombine.low %v72_v34, %v76_v37  ;;  %v963_v39 = vcombine.high %v72_v34, %v76_v37  ;;  %v1210_v45 = vld [vmem:[#allocation6 + $0x1f0] sm:$0xff]   ;;  %v1213_v48 = vld [vmem:[#allocation6 + $0x168] sm:$0xff]   ;;  %v1217_v52 = vld [vmem:[#allocation6 + $0x160] sm:$0xff]  }
  0x37   :  { %1051 = vmatpush3.bf16.msra.mxu0 %v1187_v14  ;;  %v1211_v46 = vld [vmem:[#allocation6 + $0x130] sm:$0xff]   ;;  %v1214_v49 = vld [vmem:[#allocation6 + $0x1e8] sm:$0xff]   ;;  %v1218_v53 = vld [vmem:[#allocation6 + $0x1e0] sm:$0xff]  }
  0x38   :  { %1073 = vmatpush3.bf16.msra.mxu1 %v1188_v15  ;;  %1052 = vmatprep.subr.bf16.mxu0 %v1189_v16  ;;  %v1212_v47 = vld [vmem:[#allocation6 + $0x1b0] sm:$0xff]   ;;  %v1215_v50 = vld [vmem:[#allocation6 + $0x128] sm:$0xff]   ;;  %v1219_v54 = vld [vmem:[#allocation6 + $0x120] sm:$0xff]  }
  0x39   :  { %1074 = vmatprep.subr.bf16.mxu1 %v1190_v17  ;;  %663 = vmatprep.mubr.bf16.mxu0 %v961_v36  ;;  %v1216_v51 = vld [vmem:[#allocation6 + $0x1a8] sm:$0xff]   ;;  %v1220_v55 = vld [vmem:[#allocation6 + $0x1a0] sm:$0xff]   ;;  %v1221_v56 = vld [vmem:[#allocation6 + $0x158] sm:$0xff]   ;;  %v1346_v17 = vmov 0.0  }
  0x3a   :  { %704 = vmatprep.mubr.bf16.mxu1 %v963_v39  ;;  %v1222_v57 = vld [vmem:[#allocation6 + $0x1d8] sm:$0xff]   ;;  %v1225_v60 = vld [vmem:[#allocation6 + $0x150] sm:$0xff]   ;;  %v1229_v0 = vld [vmem:[#allocation6 + $0x148] sm:$0xff]  }
  0x3b   :  { %1053 = vmatpush3.bf16.msra.mxu0 %v1191_v18  ;;  %v1223_v58 = vld [vmem:[#allocation6 + $0x118] sm:$0xff]   ;;  %v1226_v61 = vld [vmem:[#allocation6 + $0x1d0] sm:$0xff]   ;;  %v1230_v1 = vld [vmem:[#allocation6 + $0x1c8] sm:$0xff]  }
  0x3c   :  { %1075 = vmatpush3.bf16.msra.mxu1 %v1192_v19  ;;  %1054 = vmatprep.subr.bf16.mxu0 %v1193_v20  ;;  %v1224_v59 = vld [vmem:[#allocation6 + $0x198] sm:$0xff]   ;;  %v1227_v62 = vld [vmem:[#allocation6 + $0x110] sm:$0xff]   ;;  %v1231_v2 = vld [vmem:[#allocation6 + $0x108] sm:$0xff]  }
  0x3d   :  { %1076 = vmatprep.subr.bf16.mxu1 %v1194_v21  ;;  %v1228_v63 = vld [vmem:[#allocation6 + $0x190] sm:$0xff]   ;;  %v1232_v3 = vld [vmem:[#allocation6 + $0x188] sm:$0xff]   ;;  %v1233_v4 = vld [vmem:[#allocation6 + $0x140] sm:$0xff]  }
  0x3e   :  { %v1234_v5 = vld [vmem:[#allocation6 + $0x1c0] sm:$0xff]   ;;  %v73_v8 = vld [vmem:[#allocation3 + $0x10] sm:$0xff]  ;;  %v74_v12 = vld [vmem:[#allocation3 + $0x18] sm:$0xff] }
  0x3f   :  { %1055 = vmatpush3.bf16.msra.mxu0 %v1195_v22  ;;  %v1235_v6 = vld [vmem:[#allocation6 + $0x100] sm:$0xff]   ;;  %v77_v9 = vld [vmem:[#allocation3 + $0x30] sm:$0xff]  ;;  %v78_v13 = vld [vmem:[#allocation3 + $0x38] sm:$0xff] }
  0x40   :  { %1077 = vmatpush3.bf16.msra.mxu1 %v1196_v23  ;;  %1056 = vmatprep.subr.bf16.mxu0 %v1197_v24  ;;  %v1236_v7 = vld [vmem:[#allocation6 + $0x180] sm:$0xff]   ;;  %v964_v10 = vcombine.low %v73_v8, %v77_v9  ;;  %v965_v11 = vcombine.high %v73_v8, %v77_v9  ;;  %v966_v14 = vcombine.low %v74_v12, %v78_v13  ;;  %v1237_v16 = vld [vmem:[#allocation8 + $0x38] sm:$0xff]   ;;  %v1238_v18 = vld [vmem:[#allocation8 + $0x30] sm:$0xff]  }
  0x41   :  { %1078 = vmatprep.subr.bf16.mxu1 %v1198_v25  ;;  %v967_v15 = vcombine.high %v74_v12, %v78_v13  ;;  %v1239_v19 = vld [vmem:[#allocation8 + $0x28] sm:$0xff]   ;;  %v1240_v20 = vld [vmem:[#allocation8 + $0x20] sm:$0xff]   ;;  %v1241_v21 = vld [vmem:[#allocation8 + $0x18] sm:$0xff]  }
  0x42   :  { %v1242_v22 = vld [vmem:[#allocation8 + $0x10] sm:$0xff]   ;;  %v1243_v23 = vld [vmem:[#allocation8 + $0x8] sm:$0xff]   ;;  %v1244_v24 = vld [vmem:[#allocation8] sm:$0xff]  }
  0x43   :  { %1057 = vmatpush3.bf16.msra.mxu0 %v1199_v26 }
  0x44   :  { %1079 = vmatpush3.bf16.msra.mxu1 %v1200_v27  ;;  %1058 = vmatprep.subr.bf16.mxu0 %v1201_v28 }
  0x45   :  { %1080 = vmatprep.subr.bf16.mxu1 %v1202_v29 }
  0x47   :  { %1059 = vmatpush3.bf16.msra.mxu0 %v1203_v30 }
  0x48   :  { %1081 = vmatpush3.bf16.msra.mxu1 %v1204_v31  ;;  %1088 = vmatprep.subr.bf16.mxu0 %v1205_v40 }
  0x49   :  { %1110 = vmatprep.subr.bf16.mxu1 %v1206_v41 }
  0x4a   :  { %664 = vmatmul.mubr.bf16.vlgmr.msra.gmra.mxu0 %v960_v35 }
  0x4b   :  { %705 = vmatmul.mubr.bf16.vlgmr.msra.gmra.mxu1 %v962_v38  ;;  %1089 = vmatpush3.bf16.msra.mxu0 %v1207_v42 }
  0x4c   :  { %1111 = vmatpush3.bf16.msra.mxu1 %v1208_v43  ;;  %1090 = vmatprep.subr.bf16.mxu0 %v1209_v44 }
  0x4d   :  { %1112 = vmatprep.subr.bf16.mxu1 %v1210_v45  ;;  %745 = vmatprep.mubr.bf16.mxu0 %v965_v11 }
  0x4e   :  { %786 = vmatprep.mubr.bf16.mxu1 %v967_v15 }
  0x4f   :  { %1091 = vmatpush3.bf16.msra.mxu0 %v1211_v46 }
  0x50   :  { %1113 = vmatpush3.bf16.msra.mxu1 %v1212_v47  ;;  %1092 = vmatprep.subr.bf16.mxu0 %v1213_v48 }
  0x51   :  { %1114 = vmatprep.subr.bf16.mxu1 %v1214_v49 }
  0x53   :  { %1093 = vmatpush3.bf16.msra.mxu0 %v1215_v50 }
  0x54   :  { %1115 = vmatpush3.bf16.msra.mxu1 %v1216_v51  ;;  %1094 = vmatprep.subr.bf16.mxu0 %v1217_v52  ;;  %v1032_v52 = vld [vmem:[%s1401_s2] ss:$0 sm:$0xff]  ;;  %s1348_s2 = smov [#allocation9]  }
  0x55   :  { %1116 = vmatprep.subr.bf16.mxu1 %v1218_v53  ;;  %s947_s13 = sshll.u32 %s1348_s2, 4  ;;  %s948_s13 = int_to_ptr.vmem [resolvable:$true] %s947_s13 }
  0x56   :  { %p1318_p2 = scmp.lt.s32.totalorder %s948_s13, %s948_s13 }
  0x57   :  { %1095 = vmatpush3.bf16.msra.mxu0 %v1219_v54 }
  0x58   :  { %1117 = vmatpush3.bf16.msra.mxu1 %v1220_v55  ;;  %1096 = vmatprep.subr.bf16.mxu0 %v1221_v56 }
  0x59   :  { %1118 = vmatprep.subr.bf16.mxu1 %v1222_v57 }
  0x5b   :  { %1097 = vmatpush3.bf16.msra.mxu0 %v1223_v58 }
  0x5c   :  { %1119 = vmatpush3.bf16.msra.mxu1 %v1224_v59  ;;  %1098 = vmatprep.subr.bf16.mxu0 %v1225_v60 }
  0x5d   :  { %1120 = vmatprep.subr.bf16.mxu1 %v1226_v61  ;;  %v1033_v61 = vld [vmem:[%s1403_s4] ss:$0 sm:$0xff]  ;;  %s1313_s4 = scalar_lea.vmem %s948_s13, 256 }
  0x5e   :  { %p1314_p1 = scmp.ne.s32.totalorder %s948_s13, %s1313_s4  ;;  %p1319_p3 = scmp.lt.s32.totalorder %s1313_s4, %s1313_s4 }
  0x5f   :  { %1099 = vmatpush3.bf16.msra.mxu0 %v1227_v62 }
  0x60   :  { %1121 = vmatpush3.bf16.msra.mxu1 %v1228_v63  ;;  %1100 = vmatprep.subr.bf16.mxu0 %v1229_v0  ;;  %p1320_p4 = por %p1319_p3, %p1318_p2 }
  0x61   :  { %1122 = vmatprep.subr.bf16.mxu1 %v1230_v1 }
  0x62   :  { %p1321_p5 = pnand %p1320_p4, %p1314_p1 }
  0x63   :  { %1101 = vmatpush3.bf16.msra.mxu0 %v1231_v2 }
  0x64   :  { %1123 = vmatpush3.bf16.msra.mxu1 %v1232_v3  ;;  %1102 = vmatprep.subr.bf16.mxu0 %v1233_v4 }
  0x65   :  { %1124 = vmatprep.subr.bf16.mxu1 %v1234_v5 }
  0x67   :  { %1103 = vmatpush3.bf16.msra.mxu0 %v1235_v6 }
  0x68   :  { %1125 = vmatpush3.bf16.msra.mxu1 %v1236_v7  ;;  %1141 = vmatprep.subr.bf16.mxu0 %v1346_v17 }
  0x6a   :  { %746 = vmatmul.mubr.bf16.vlgmr.msra.gmra.mxu0 %v964_v10 }
  0x6b   :  { %787 = vmatmul.mubr.bf16.vlgmr.msra.gmra.mxu1 %v966_v14  ;;  %1142 = vmatpush3.bf16.msra.mxu0 %v1237_v16 }
  0x6c   :  { %1143 = vmatprep.subr.bf16.mxu0 %v1346_v17  ;;  %1157 = vmatprep.mubr.msk.bf16.mxu0 %vm1347_vm0, %v1346_v17 }
  0x6f   :  { %1144 = vmatpush3.bf16.msra.mxu0 %v1238_v18 }
  0x70   :  { %1145 = vmatprep.subr.bf16.mxu0 %v1346_v17 }
  0x73   :  { %1146 = vmatpush3.bf16.msra.mxu0 %v1239_v19 }
  0x74   :  { %1147 = vmatprep.subr.bf16.mxu0 %v1346_v17 }
  0x77   :  { %1148 = vmatpush3.bf16.msra.mxu0 %v1240_v20 }
  0x78   :  { %1149 = vmatprep.subr.bf16.mxu0 %v1346_v17 }
  0x7b   :  { %1150 = vmatpush3.bf16.msra.mxu0 %v1241_v21 }
  0x7c   :  { %1151 = vmatprep.subr.bf16.mxu0 %v1346_v17 }
  0x7f   :  { %1152 = vmatpush3.bf16.msra.mxu0 %v1242_v22 }
  0x80   :  { %1153 = vmatprep.subr.bf16.mxu0 %v1346_v17 }
  0x83   :  { %1154 = vmatpush3.bf16.msra.mxu0 %v1243_v23 }
  0x84   :  { %1155 = vmatprep.subr.bf16.mxu0 %v1346_v17 }
  0x87   :  { %1156 = vmatpush3.bf16.msra.mxu0 %v1244_v24 }
 0x10a   :  { %v1060_v25 = vpop.f32.mrf.mxu0 }
 0x10b   :  { %v1082_v26 = vpop.f32.mrf.mxu1 }
 0x10c   :  { %v1061_v27 = vpop.f32.mrf.mxu0 }
 0x10d   :  { %v1083_v28 = vpop.f32.mrf.mxu1  ;;  %v1062_v32 = vadd.f32 %v1061_v27, %v1060_v25 }
 0x10e   :  { %v1063_v29 = vpop.f32.mrf.mxu0  ;;  %v1084_v33 = vadd.f32 %v1083_v28, %v1082_v26 }
 0x10f   :  { %v1085_v30 = vpop.f32.mrf.mxu1 }
 0x110   :  { %v1064_v31 = vpop.f32.mrf.mxu0  ;;  %v707_v38 = vadd.f32 %v1084_v33, %v1062_v32 }
 0x111   :  { %v1086_v34 = vpop.f32.mrf.mxu1  ;;  %v1065_v39 = vadd.f32 %v1064_v31, %v1063_v29 }
 0x112   :  { %v1087_v40 = vadd.f32 %v1086_v34, %v1085_v30 }
 0x114   :  { %v710_v48 = vadd.f32 %v1087_v40, %v1065_v39 }
 0x12a   :  { %v1104_v35 = vpop.f32.mrf.mxu0 }
 0x12b   :  { %v1126_v36 = vpop.f32.mrf.mxu1 }
 0x12c   :  { %v1105_v37 = vpop.f32.mrf.mxu0 }
 0x12d   :  { %v1106_v41 = vadd.f32 %v1105_v37, %v1104_v35  ;;  %v1127_v42 = vpop.f32.mrf.mxu1 }
 0x12e   :  { %v1107_v43 = vpop.f32.mrf.mxu0  ;;  %v1128_v45 = vadd.f32 %v1127_v42, %v1126_v36 }
 0x12f   :  { %v748_v44 = vadd.f32 %v1106_v41, %v707_v38  ;;  %v1129_v46 = vpop.f32.mrf.mxu1 }
 0x130   :  { %v1108_v47 = vpop.f32.mrf.mxu0 }
 0x131   :  { %v789_v49 = vadd.f32 %v1128_v45, %v748_v44  ;;  %v1109_v50 = vadd.f32 %v1108_v47, %v1107_v43  ;;  %v1130_v51 = vpop.f32.mrf.mxu1 }
 0x132   :  { %v1131_v54 = vadd.f32 %v1130_v51, %v1129_v46 }
 0x133   :  { %v751_v53 = vadd.f32 %v1109_v50, %v710_v48  ;;  %v811_v55 = vadd.f32 %v1032_v52, %v789_v49 }
 0x135   :  { %v792_v56 = vadd.f32 %v1131_v54, %v751_v53  ;;  %v813_v58 = vmax.f32 %v811_v55, 0.0 }
 0x137   :  { %v812_v57 = vadd.f32 %v1032_v52, %v792_v56 }
 0x139   :  { %v814_v59 = vmax.f32 %v812_v57, 0.0 }
 0x13b   :  { %v815_v60 = vpack.c.bf16 %v814_v59, %v813_v58 }
 0x13d   :  { %1158 = vmatmul.mubr.bf16.vlgmr.msra.gmra.mxu0 %v815_v60 }
 0x1fd   :  { %v921_v62 = vpop.f32.mrf.mxu0 }
 0x1fe   :  { %v922_v63 = vadd.f32 %v1033_v61, %v921_v62 }
 0x1ff   :  { %v1159_v0 = vpop.f32.mrf.mxu0 }
 0x200   :  { %v1042_v1 = vmul.f32 -1.442695, %v922_v63 }
 0x201   :  { %v924_v2 = vpop.f32.mrf.mxu0 }
 0x202   :  { %1245 = vpow2.f32 %v1042_v1  ;;  %v925_v3 = vadd.f32 %v1033_v61, %v924_v2 }
 0x203   :  { %v1160_v4 = vpop.f32.mrf.mxu0 }
 0x204   :  { %v1043_v5 = vmul.f32 -1.442695, %v925_v3 }
 0x206   :  { %1247 = vpow2.f32 %v1043_v5 }
 0x20f   :  { %v1246_v6 = vpop.eup %1245 }
 0x210   :  { %v934_v7 = vadd.f32 1.0, %v1246_v6 }
 0x212   :  { %1249 = vrcp.f32 %v934_v7 }
 0x213   :  { %v1248_v8 = vpop.eup %1247 }
 0x214   :  { %v935_v9 = vadd.f32 1.0, %v1248_v8 }
 0x216   :  { %1251 = vrcp.f32 %v935_v9 }
 0x21f   :  { %v1250_v10 = vpop.eup %1249 }
 0x220   :  { %940 = vst [vmem:[#allocation9] sm:$0xff] %v1250_v10 }
 0x223   :  { %v1252_v11 = vpop.eup %1251 }
 0x224   :  { %941 = vst [vmem:[#allocation9 + $0x8] sm:$0xff] %v1252_v11 }
 0x225   :  { %1324 = shalt.err (!%p1321_p5)
}
 0x226   :  { %s1349_s14 = smov 128   ;;  %s1350_s15 = smov 8  }
 0x227   :  { %953 = dma.vmem_to_hbm [thread:$0]  %s948_s13, 256, %s1404_s5, [#allocation5], %s1349_s14, %s1349_s14, %s1350_s15  }
 0x228   :  { %1337 = dma.done.wait [#allocation5], 256  }
 0x229   :  { %1338 = vsyncadd [#allocation5], 4294967040 }
 0x22a   :  { %957 = vsyncpa [#allocation4], 1 }
 0x22b   :  { %958 = vsyncpa [#allocation7], 1 }
 0x22c   :  { %959 = vsyncpa [#allocation5], 1 }

</bundles_post_ra>
